<compile_context>
chip_gen: v5e
topology: v5e:2x2
jax: 0.10.0
libtpu: 0.0.40
codegen_flags: <defaults>
</compile_context>

<pallas_src>
import jax
import jax.numpy as jnp
from jax.experimental import pallas as pl
from jax.experimental.pallas import tpu as pltpu

IN_DIM = 28 * 28 * 3   # 2352
H1 = 64
H2 = 32
OUT = 1

# Lane-aligned padded hidden/output dims.  Weights are VMEM-resident, so the
# pad cost is irrelevant; MXU has ample slack at these sizes (guidance #10).
H1_PAD = 128
H2_PAD = 128
OUT_PAD = 128

MAX_TB = 1024                         # batch-tile cap (rows)
MIN_GRID_STEPS = 4                    # aim for >= 4 grid steps
VMEM_LIMIT_BYTES = 48 * 1024 * 1024   # safe on v5e/v6e (128 MiB) and v7x (64 MiB)


def mlp_kernel(x_ref, w1_ref, b1_ref, w2_ref, b2_ref, w3_ref, b3_ref, o_ref):
    # x_ref: (TB, 2352) f32; weights bf16 (in, out_pad); biases f32 (1, out_pad).
    x = x_ref[...].astype(jnp.bfloat16)   # in-kernel cast: halves x HBM traffic

    h1 = jnp.dot(x, w1_ref[...], preferred_element_type=jnp.float32) + b1_ref[...]
    h1 = jnp.maximum(h1, 0.0)

    h2 = jnp.dot(h1.astype(jnp.bfloat16), w2_ref[...],
                 preferred_element_type=jnp.float32) + b2_ref[...]
    h2 = jnp.maximum(h2, 0.0)

    y = jnp.dot(h2.astype(jnp.bfloat16), w3_ref[...],
                preferred_element_type=jnp.float32) + b3_ref[...]
    # Narrow store: only the real output column goes back to HBM.
    o_ref[...] = y[:, :OUT].astype(o_ref.dtype)


def prepare_params(params):
    """Pad/cast weights ONCE (hoisted out of the per-call path)."""
    w1, b1, w2, b2, w3, b3 = params
    w1p = jnp.zeros((IN_DIM, H1_PAD), jnp.bfloat16).at[:, :H1].set(
        w1.astype(jnp.bfloat16))
    b1p = jnp.zeros((1, H1_PAD), jnp.float32).at[:, :H1].set(b1)
    w2p = jnp.zeros((H1_PAD, H2_PAD), jnp.bfloat16).at[:H1, :H2].set(
        w2.astype(jnp.bfloat16))
    b2p = jnp.zeros((1, H2_PAD), jnp.float32).at[:, :H2].set(b2)
    w3p = jnp.zeros((H2_PAD, OUT_PAD), jnp.bfloat16).at[:H2, :OUT].set(
        w3.astype(jnp.bfloat16))
    b3p = jnp.zeros((1, OUT_PAD), jnp.float32).at[:, :OUT].set(b3)
    return w1p, b1p, w2p, b2p, w3p, b3p


def _round_up(n, m):
    return ((n + m - 1) // m) * m


@jax.jit
def mlp_forward(x_nchw, padded_params):
    w1p, b1p, w2p, b2p, w3p, b3p = padded_params

    B = x_nchw.shape[0]
    # nn.Flatten() on NCHW input; keep f32 -- the bf16 cast happens in-kernel.
    x = x_nchw.reshape(B, -1)
    assert x.shape[1] == IN_DIM

    # Batch tile: multiple of 8 sublanes, aimed at >= MIN_GRID_STEPS grid steps
    # (megacore sharding on v7x + cross-step DMA/compute overlap), cap MAX_TB.
    TB = min(MAX_TB, _round_up(pl.cdiv(B, MIN_GRID_STEPS), 8))
    B_pad = _round_up(B, TB)
    if B_pad != B:
        # Zero rows are exact no-ops through the matmuls; their ReLU(bias) junk
        # is dropped by the final [:B] slice.
        x = jnp.pad(x, ((0, B_pad - B), (0, 0)))

    out = pl.pallas_call(
        mlp_kernel,
        out_shape=jax.ShapeDtypeStruct((B_pad, OUT), jnp.float32),
        grid=(B_pad // TB,),
        in_specs=[
            # x: streamed; last block dim == full array dim (2352), so the
            # 128-divisibility rule does not apply -- no K padding needed.
            pl.BlockSpec((TB, IN_DIM), lambda i: (i, 0)),
            # Weights / biases: constant index_map -> resident in VMEM.
            pl.BlockSpec((IN_DIM, H1_PAD), lambda i: (0, 0)),
            pl.BlockSpec((1, H1_PAD), lambda i: (0, 0)),
            pl.BlockSpec((H1_PAD, H2_PAD), lambda i: (0, 0)),
            pl.BlockSpec((1, H2_PAD), lambda i: (0, 0)),
            pl.BlockSpec((H2_PAD, OUT_PAD), lambda i: (0, 0)),
            pl.BlockSpec((1, OUT_PAD), lambda i: (0, 0)),
        ],
        # Narrow output (last dim == full array dim 1): a few masked stores,
        # negligible vs the x stream, and no wrapper-side lane slice.
        out_specs=pl.BlockSpec((TB, OUT), lambda i: (i, 0)),
        compiler_params=pltpu.CompilerParams(
            dimension_semantics=("parallel",),   # shard batch tiles across TCs
            vmem_limit_bytes=VMEM_LIMIT_BYTES,   # f32 x blocks @ TB=1024 ~21 MiB
        ),
    )(x, w1p, b1p, w2p, b2p, w3p, b3p)

    return out[:B]   # (B, 1)


def init_params(key):
    """Deterministic init mimicking torch.nn.Linear default (uniform +/- 1/sqrt(fan_in))."""
    def linear(key, fan_in, fan_out):
        kw, kb = jax.random.split(key)
        bound = 1.0 / jnp.sqrt(jnp.float32(fan_in))
        w = jax.random.uniform(kw, (fan_in, fan_out), jnp.float32, -bound, bound)
        b = jax.random.uniform(kb, (1, fan_out), jnp.float32, -bound, bound)
        return w, b

    k1, k2, k3 = jax.random.split(key, 3)
    w1, b1 = linear(k1, IN_DIM, H1)
    w2, b2 = linear(k2, H1, H2)
    w3, b3 = linear(k3, H2, OUT)
    return (w1, b1, w2, b2, w3, b3)


def mlp_reference(x_nchw, params):
    w1, b1, w2, b2, w3, b3 = params
    x = x_nchw.reshape(x_nchw.shape[0], -1).astype(jnp.float32)
    h1 = jnp.maximum(x @ w1 + b1, 0.0)
    h2 = jnp.maximum(h1 @ w2 + b2, 0.0)
    return h2 @ w3 + b3


if __name__ == "__main__":
    key = jax.random.PRNGKey(0)
    kp, kx = jax.random.split(key)

    params = init_params(kp)
    padded_params = prepare_params(params)   # one-time pad/cast, reused per call

    # Small batch of 3-channel 28x28 images (NCHW), as the module implies.
    x = jax.random.normal(kx, (2, 3, 28, 28), jnp.float32)

    out = mlp_forward(x, padded_params)
    jax.block_until_ready(out)

    ref = mlp_reference(x, params)
    assert out.shape == (2, 1)
    # bf16 MXU inputs over a 2352-length contraction -> looser tolerance.
    assert jnp.allclose(out, ref, atol=5e-2, rtol=5e-2), "mismatch vs reference"

    print("KERNEL_OK")
</pallas_src>

<mosaic_0001>
module attributes {stable_mosaic.version = 11 : i64} {
  func.func @mlp_kernel(%arg0: i32, %arg1: memref<8x2352xf32, #tpu.memory_space<vmem>>, %arg2: memref<2352x128xbf16, #tpu.memory_space<vmem>>, %arg3: memref<1x128xf32, #tpu.memory_space<vmem>>, %arg4: memref<128x128xbf16, #tpu.memory_space<vmem>>, %arg5: memref<1x128xf32, #tpu.memory_space<vmem>>, %arg6: memref<128x128xbf16, #tpu.memory_space<vmem>>, %arg7: memref<1x128xf32, #tpu.memory_space<vmem>>, %arg8: memref<8x1xf32, #tpu.memory_space<vmem>>) attributes {dimension_semantics = [#tpu.dimension_semantics<parallel>], iteration_bounds = array<i64: 1>, scalar_prefetch = 0 : i64, scratch_operands = 0 : i64, tpu.core_type = #tpu.core_type<tc>, window_params = [{transform_indices = @transform_0, window_bounds = array<i64: 8, 2352>}, {pipeline_mode = #tpu.pipeline_mode<synchronous>, transform_indices = @transform_1, window_bounds = array<i64: 2352, 128>}, {pipeline_mode = #tpu.pipeline_mode<synchronous>, transform_indices = @transform_2, window_bounds = array<i64: 1, 128>}, {pipeline_mode = #tpu.pipeline_mode<synchronous>, transform_indices = @transform_3, window_bounds = array<i64: 128, 128>}, {pipeline_mode = #tpu.pipeline_mode<synchronous>, transform_indices = @transform_4, window_bounds = array<i64: 1, 128>}, {pipeline_mode = #tpu.pipeline_mode<synchronous>, transform_indices = @transform_5, window_bounds = array<i64: 128, 128>}, {pipeline_mode = #tpu.pipeline_mode<synchronous>, transform_indices = @transform_6, window_bounds = array<i64: 1, 128>}, {transform_indices = @transform_7, window_bounds = array<i64: 8, 1>}]} {
    %c0 = arith.constant 0 : index
    %c0_0 = arith.constant 0 : index
    %0 = vector.load %arg1[%c0, %c0_0] : memref<8x2352xf32, #tpu.memory_space<vmem>>, vector<8x2352xf32>
    %1 = arith.truncf %0 : vector<8x2352xf32> to vector<8x2352xbf16>
    %c0_1 = arith.constant 0 : index
    %c0_2 = arith.constant 0 : index
    %2 = vector.load %arg2[%c0_1, %c0_2] : memref<2352x128xbf16, #tpu.memory_space<vmem>>, vector<2352x128xbf16>
    %cst = arith.constant dense<0.000000e+00> : vector<8x128xf32>
    %3 = tpu.matmul %1, %2, %cst {dimension_numbers = #tpu.dot_dimension_numbers<[1], [0], [0], [1], [0, 0, 1, 1], [], []>} : vector<8x2352xbf16>, vector<2352x128xbf16>, vector<8x128xf32> -> vector<8x128xf32>
    %c0_3 = arith.constant 0 : index
    %c0_4 = arith.constant 0 : index
    %4 = vector.load %arg3[%c0_3, %c0_4] : memref<1x128xf32, #tpu.memory_space<vmem>>, vector<1x128xf32>
    %5 = vector.broadcast %4 : vector<1x128xf32> to vector<8x128xf32>
    %6 = arith.addf %3, %5 : vector<8x128xf32>
    %cst_5 = arith.constant 0.000000e+00 : f32
    %7 = vector.broadcast %cst_5 : f32 to vector<8x128xf32>
    %8 = arith.maximumf %6, %7 : vector<8x128xf32>
    %9 = arith.truncf %8 : vector<8x128xf32> to vector<8x128xbf16>
    %c0_6 = arith.constant 0 : index
    %c0_7 = arith.constant 0 : index
    %10 = vector.load %arg4[%c0_6, %c0_7] : memref<128x128xbf16, #tpu.memory_space<vmem>>, vector<128x128xbf16>
    %cst_8 = arith.constant dense<0.000000e+00> : vector<8x128xf32>
    %11 = tpu.matmul %9, %10, %cst_8 {dimension_numbers = #tpu.dot_dimension_numbers<[1], [0], [0], [1], [0, 0, 1, 1], [], []>} : vector<8x128xbf16>, vector<128x128xbf16>, vector<8x128xf32> -> vector<8x128xf32>
    %c0_9 = arith.constant 0 : index
    %c0_10 = arith.constant 0 : index
    %12 = vector.load %arg5[%c0_9, %c0_10] : memref<1x128xf32, #tpu.memory_space<vmem>>, vector<1x128xf32>
    %13 = vector.broadcast %12 : vector<1x128xf32> to vector<8x128xf32>
    %14 = arith.addf %11, %13 : vector<8x128xf32>
    %cst_11 = arith.constant 0.000000e+00 : f32
    %15 = vector.broadcast %cst_11 : f32 to vector<8x128xf32>
    %16 = arith.maximumf %14, %15 : vector<8x128xf32>
    %17 = arith.truncf %16 : vector<8x128xf32> to vector<8x128xbf16>
    %c0_12 = arith.constant 0 : index
    %c0_13 = arith.constant 0 : index
    %18 = vector.load %arg6[%c0_12, %c0_13] : memref<128x128xbf16, #tpu.memory_space<vmem>>, vector<128x128xbf16>
    %cst_14 = arith.constant dense<0.000000e+00> : vector<8x128xf32>
    %19 = tpu.matmul %17, %18, %cst_14 {dimension_numbers = #tpu.dot_dimension_numbers<[1], [0], [0], [1], [0, 0, 1, 1], [], []>} : vector<8x128xbf16>, vector<128x128xbf16>, vector<8x128xf32> -> vector<8x128xf32>
    %c0_15 = arith.constant 0 : index
    %c0_16 = arith.constant 0 : index
    %20 = vector.load %arg7[%c0_15, %c0_16] : memref<1x128xf32, #tpu.memory_space<vmem>>, vector<1x128xf32>
    %21 = vector.broadcast %20 : vector<1x128xf32> to vector<8x128xf32>
    %22 = arith.addf %19, %21 : vector<8x128xf32>
    %23 = vector.extract_strided_slice %22 {offsets = [0, 0], sizes = [8, 1], strides = [1, 1]} : vector<8x128xf32> to vector<8x1xf32>
    %c0_17 = arith.constant 0 : index
    %c0_18 = arith.constant 0 : index
    %24 = vector.load %arg8[%c0_17, %c0_18] : memref<8x1xf32, #tpu.memory_space<vmem>>, vector<8x1xf32>
    tpu.vector_store %arg8[%c0_17, %c0_18], %23 {strides = array<i32>} : memref<8x1xf32, #tpu.memory_space<vmem>>, vector<8x1xf32>,
    return
  }
  func.func @transform_0(%arg0: i32) -> (i32, i32) {
    %c0_i32 = arith.constant 0 : i32
    %c0_i32_0 = arith.constant 0 : i32
    return %arg0, %c0_i32 : i32, i32
  }
  func.func @transform_1(%arg0: i32) -> (i32, i32) {
    %c0_i32 = arith.constant 0 : i32
    %c0_i32_0 = arith.constant 0 : i32
    %c0_i32_1 = arith.constant 0 : i32
    return %c0_i32, %c0_i32_0 : i32, i32
  }
  func.func @transform_2(%arg0: i32) -> (i32, i32) {
    %c0_i32 = arith.constant 0 : i32
    %c0_i32_0 = arith.constant 0 : i32
    %c0_i32_1 = arith.constant 0 : i32
    return %c0_i32, %c0_i32_0 : i32, i32
  }
  func.func @transform_3(%arg0: i32) -> (i32, i32) {
    %c0_i32 = arith.constant 0 : i32
    %c0_i32_0 = arith.constant 0 : i32
    %c0_i32_1 = arith.constant 0 : i32
    return %c0_i32, %c0_i32_0 : i32, i32
  }
  func.func @transform_4(%arg0: i32) -> (i32, i32) {
    %c0_i32 = arith.constant 0 : i32
    %c0_i32_0 = arith.constant 0 : i32
    %c0_i32_1 = arith.constant 0 : i32
    return %c0_i32, %c0_i32_0 : i32, i32
  }
  func.func @transform_5(%arg0: i32) -> (i32, i32) {
    %c0_i32 = arith.constant 0 : i32
    %c0_i32_0 = arith.constant 0 : i32
    %c0_i32_1 = arith.constant 0 : i32
    return %c0_i32, %c0_i32_0 : i32, i32
  }
  func.func @transform_6(%arg0: i32) -> (i32, i32) {
    %c0_i32 = arith.constant 0 : i32
    %c0_i32_0 = arith.constant 0 : i32
    %c0_i32_1 = arith.constant 0 : i32
    return %c0_i32, %c0_i32_0 : i32, i32
  }
  func.func @transform_7(%arg0: i32) -> (i32, i32) {
    %c0_i32 = arith.constant 0 : i32
    %c0_i32_0 = arith.constant 0 : i32
    return %arg0, %c0_i32 : i32, i32
  }
}

</mosaic_0001>

<bundles_post_ra>
// kernel: mlp_forward.1
= control target key start
LH: loop header
LB: loop body
LE: loop exit
PB: predicated region body
PF: predicated region fallthrough
CT: control target
= control target key end

     0   :  { %12 = vsyncpa [#allocation3], 0  ;;  %s2533_s27 = smov [#allocation2]   ;;  %s2534_s29 = smov 64   ;;  %s2696_s0 = inlined_call_operand.vmem [shape: f32[8,2352], index: 0, kind: input, shape index: {}]   ;;  %s2697_s1 = inlined_call_operand.hbm [shape: bf16[2352,128], index: 1, kind: input, shape index: {}]   ;;  %s2698_s2 = inlined_call_operand.vmem [shape: f32[1,128], index: 2, kind: input, shape index: {}]   ;;  %s2699_s3 = inlined_call_operand.vmem [shape: bf16[128,128], index: 3, kind: input, shape index: {}]   ;;  %s2700_s4 = inlined_call_operand.vmem [shape: f32[1,128], index: 4, kind: input, shape index: {}]   ;;  %s2701_s5 = inlined_call_operand.vmem [shape: bf16[128,128], index: 5, kind: input, shape index: {}]   ;;  %s2702_s6 = inlined_call_operand.vmem [shape: f32[1,128], index: 6, kind: input, shape index: {}]   ;;  %s2703_s7 = inlined_call_operand.vmem [shape: f32[8,1], index: 7, kind: output, shape index: {}]  }
   0x1   :  { %s19_s26 = sshll.u32 %s2697_s1, 4  ;;  %s21_s28 = sshll.u32 %s2533_s27, 4  ;;  %s20_s26 = int_to_ptr.hbm [resolvable:$true] %s19_s26  ;;  %s22_s28 = int_to_ptr.vmem [resolvable:$true] %s21_s28 }
   0x2   :  { %s2535_s30 = smov 4  }
   0x3   :  { %27 = dma.hbm_to_vmem [thread:$0]  %s20_s26, 18816, %s22_s28, [#allocation3], %s2534_s29, %s2534_s29, %s2535_s30  }
   0x4   :  { %2531 = dma.done.wait [#allocation3], 18816  }
   0x5   :  { %2532 = vsyncadd [#allocation3], 4294948480  ;;  %v2345_v0 = vld [vmem:[#allocation2 + $0x38] sm:$0xff]  ;;  %v2344_v4 = vld [vmem:[#allocation2 + $0x30] sm:$0xff]  ;;  %vm1261_vm0 = vcmask 392192   ;;  %vm1678_vm1 = vcmask 7168  }
   0x6   :  { %v2353_v1 = vld [vmem:[#allocation2 + $0x78] sm:$0xff]  ;;  %1265 = vmatpush.bf16.msra.mxu0 %v2345_v0  ;;  %v2352_v5 = vld [vmem:[#allocation2 + $0x70] sm:$0xff]  ;;  %v2343_v8 = vld [vmem:[#allocation2 + $0x28] sm:$0xff] }
   0x7   :  { %v2361_v2 = vld [vmem:[#allocation2 + $0xb8] sm:$0xff]  ;;  %1278 = vmatpush.bf16.msra.mxu1 %v2353_v1  ;;  %v2360_v6 = vld [vmem:[#allocation2 + $0xb0] sm:$0xff]  ;;  %v2351_v9 = vld [vmem:[#allocation2 + $0x68] sm:$0xff] }
   0x8   :  { %v2369_v3 = vld [vmem:[#allocation2 + $0xf8] sm:$0xff]  ;;  %1291 = vmatpush.bf16.msra.mxu2 %v2361_v2  ;;  %v2368_v7 = vld [vmem:[#allocation2 + $0xf0] sm:$0xff]  ;;  %v2359_v10 = vld [vmem:[#allocation2 + $0xa8] sm:$0xff] }
   0x9   :  { %1304 = vmatpush.bf16.msra.mxu3 %v2369_v3  ;;  %v2367_v11 = vld [vmem:[#allocation2 + $0xe8] sm:$0xff]  ;;  %v2342_v12 = vld [vmem:[#allocation2 + $0x20] sm:$0xff]  ;;  %v2341_v16 = vld [vmem:[#allocation2 + $0x18] sm:$0xff] }
   0xa   :  { %1266 = vmatpush.bf16.msra.mxu0 %v2344_v4  ;;  %v2350_v13 = vld [vmem:[#allocation2 + $0x60] sm:$0xff]  ;;  %v2349_v17 = vld [vmem:[#allocation2 + $0x58] sm:$0xff]  ;;  %v2340_v20 = vld [vmem:[#allocation2 + $0x10] sm:$0xff] }
   0xb   :  { %1279 = vmatpush.bf16.msra.mxu1 %v2352_v5  ;;  %v2358_v14 = vld [vmem:[#allocation2 + $0xa0] sm:$0xff]  ;;  %v2357_v18 = vld [vmem:[#allocation2 + $0x98] sm:$0xff]  ;;  %v2348_v21 = vld [vmem:[#allocation2 + $0x50] sm:$0xff] }
   0xc   :  { %1292 = vmatpush.bf16.msra.mxu2 %v2360_v6  ;;  %v2366_v15 = vld [vmem:[#allocation2 + $0xe0] sm:$0xff]  ;;  %v2365_v19 = vld [vmem:[#allocation2 + $0xd8] sm:$0xff]  ;;  %v2356_v22 = vld [vmem:[#allocation2 + $0x90] sm:$0xff] }
   0xd   :  { %1305 = vmatpush.bf16.msra.mxu3 %v2368_v7  ;;  %v2364_v23 = vld [vmem:[#allocation2 + $0xd0] sm:$0xff]  ;;  %v2339_v24 = vld [vmem:[#allocation2 + $0x8] sm:$0xff]  ;;  %v2338_v28 = vld [vmem:[#allocation2] sm:$0xff] }
   0xe   :  { %1267 = vmatpush.bf16.msra.mxu0 %v2343_v8  ;;  %v2347_v25 = vld [vmem:[#allocation2 + $0x48] sm:$0xff]  ;;  %v2346_v29 = vld [vmem:[#allocation2 + $0x40] sm:$0xff]  ;;  %v2377_v32 = vld [vmem:[#allocation2 + $0x138] sm:$0xff] }
   0xf   :  { %1280 = vmatpush.bf16.msra.mxu1 %v2351_v9  ;;  %v2355_v26 = vld [vmem:[#allocation2 + $0x88] sm:$0xff]  ;;  %v43_v30 = vld [vmem:[%s2696_s0] sm:$0xff]  ;;  %v45_v33 = vld [vmem:[%s2696_s0 + $0x10] sm:$0xff] }
  0x10   :  { %1293 = vmatpush.bf16.msra.mxu2 %v2359_v10  ;;  %v2363_v27 = vld [vmem:[#allocation2 + $0xc8] sm:$0xff]  ;;  %v2354_v31 = vld [vmem:[#allocation2 + $0x80] sm:$0xff]  ;;  %v2385_v34 = vld [vmem:[#allocation2 + $0x178] sm:$0xff]  ;;  %v62_v38 = vpack.c.bf16 %v43_v30, %v43_v30  ;;  %v64_v40 = vpack.c.bf16 %v45_v33, %v45_v33 }
  0x11   :  { %1306 = vmatpush.bf16.msra.mxu3 %v2367_v11  ;;  %v2393_v35 = vld [vmem:[#allocation2 + $0x1b8] sm:$0xff]  ;;  %v44_v36 = vld [vmem:[%s2696_s0 + $0x8] sm:$0xff]  ;;  %v2362_v37 = vld [vmem:[#allocation2 + $0xc0] sm:$0xff] }
  0x12   :  { %1268 = vmatpush.bf16.msra.mxu0 %v2342_v12  ;;  %v2401_v39 = vld [vmem:[#allocation2 + $0x1f8] sm:$0xff]  ;;  %v2376_v42 = vld [vmem:[#allocation2 + $0x130] sm:$0xff]  ;;  %v63_v43 = vpack.c.bf16 %v44_v36, %v44_v36  ;;  %v2375_v48 = vld [vmem:[#allocation2 + $0x128] sm:$0xff] }
  0x13   :  { %1281 = vmatpush.bf16.msra.mxu1 %v2350_v13  ;;  %v46_v41 = vld [vmem:[%s2696_s0 + $0x18] sm:$0xff]  ;;  %v2384_v44 = vld [vmem:[#allocation2 + $0x170] sm:$0xff]  ;;  %v2383_v49 = vld [vmem:[#allocation2 + $0x168] sm:$0xff] }
  0x14   :  { %1294 = vmatpush.bf16.msra.mxu2 %v2358_v14  ;;  %v2392_v45 = vld [vmem:[#allocation2 + $0x1b0] sm:$0xff]  ;;  %v65_v46 = vpack.c.bf16 %v46_v41, %v46_v41  ;;  %v2391_v50 = vld [vmem:[#allocation2 + $0x1a8] sm:$0xff]  ;;  %v2374_v52 = vld [vmem:[#allocation2 + $0x120] sm:$0xff] }
  0x15   :  { %1307 = vmatpush.bf16.msra.mxu3 %v2366_v15  ;;  %v2400_v47 = vld [vmem:[#allocation2 + $0x1f0] sm:$0xff]  ;;  %v2399_v51 = vld [vmem:[#allocation2 + $0x1e8] sm:$0xff]  ;;  %v2382_v53 = vld [vmem:[#allocation2 + $0x160] sm:$0xff] }
  0x16   :  { %1269 = vmatpush.bf16.msra.mxu0 %v2341_v16  ;;  %v2390_v54 = vld [vmem:[#allocation2 + $0x1a0] sm:$0xff]  ;;  %v2373_v56 = vld [vmem:[#allocation2 + $0x118] sm:$0xff]  ;;  %v2372_v60 = vld [vmem:[#allocation2 + $0x110] sm:$0xff] }
  0x17   :  { %1282 = vmatpush.bf16.msra.mxu1 %v2349_v17  ;;  %v2398_v55 = vld [vmem:[#allocation2 + $0x1e0] sm:$0xff]  ;;  %v2381_v57 = vld [vmem:[#allocation2 + $0x158] sm:$0xff]  ;;  %v2380_v61 = vld [vmem:[#allocation2 + $0x150] sm:$0xff] }
  0x18   :  { %1295 = vmatpush.bf16.msra.mxu2 %v2357_v18  ;;  %v2389_v58 = vld [vmem:[#allocation2 + $0x198] sm:$0xff]  ;;  %v2388_v62 = vld [vmem:[#allocation2 + $0x190] sm:$0xff]  ;;  %v2371_v0 = vld [vmem:[#allocation2 + $0x108] sm:$0xff] }
  0x19   :  { %1308 = vmatpush.bf16.msra.mxu3 %v2365_v19  ;;  %v2397_v59 = vld [vmem:[#allocation2 + $0x1d8] sm:$0xff]  ;;  %v2396_v63 = vld [vmem:[#allocation2 + $0x1d0] sm:$0xff]  ;;  %v2379_v1 = vld [vmem:[#allocation2 + $0x148] sm:$0xff] }
  0x1a   :  { %1270 = vmatpush.bf16.msra.mxu0 %v2340_v20  ;;  %v2387_v2 = vld [vmem:[#allocation2 + $0x188] sm:$0xff]  ;;  %v2370_v4 = vld [vmem:[#allocation2 + $0x100] sm:$0xff]  ;;  %v2409_v7 = vld [vmem:[#allocation2 + $0x238] sm:$0xff] }
  0x1b   :  { %1283 = vmatpush.bf16.msra.mxu1 %v2348_v21  ;;  %v2395_v3 = vld [vmem:[#allocation2 + $0x1c8] sm:$0xff]  ;;  %v2378_v5 = vld [vmem:[#allocation2 + $0x140] sm:$0xff]  ;;  %v49_v8 = vld [vmem:[%s2696_s0 + $0x30] sm:$0xff] }
  0x1c   :  { %1296 = vmatpush.bf16.msra.mxu2 %v2356_v22  ;;  %v2386_v6 = vld [vmem:[#allocation2 + $0x180] sm:$0xff]  ;;  %v2417_v9 = vld [vmem:[#allocation2 + $0x278] sm:$0xff]  ;;  %v48_v11 = vld [vmem:[%s2696_s0 + $0x28] sm:$0xff]  ;;  %v68_v15 = vpack.c.bf16 %v49_v8, %v49_v8 }
  0x1d   :  { %1309 = vmatpush.bf16.msra.mxu3 %v2364_v23  ;;  %v47_v10 = vld [vmem:[%s2696_s0 + $0x20] sm:$0xff]  ;;  %v2425_v12 = vld [vmem:[#allocation2 + $0x2b8] sm:$0xff]  ;;  %v67_v18 = vpack.c.bf16 %v48_v11, %v48_v11  ;;  %v2408_v19 = vld [vmem:[#allocation2 + $0x230] sm:$0xff] }
  0x1e   :  { %1271 = vmatpush.bf16.msra.mxu0 %v2339_v24  ;;  %v2394_v13 = vld [vmem:[#allocation2 + $0x1c0] sm:$0xff]  ;;  %v2433_v14 = vld [vmem:[#allocation2 + $0x2f8] sm:$0xff]  ;;  %v66_v17 = vpack.c.bf16 %v47_v10, %v47_v10  ;;  %v2416_v20 = vld [vmem:[#allocation2 + $0x270] sm:$0xff] }
  0x1f   :  { %1284 = vmatpush.bf16.msra.mxu1 %v2347_v25  ;;  %v50_v16 = vld [vmem:[%s2696_s0 + $0x38] sm:$0xff]  ;;  %v2424_v21 = vld [vmem:[#allocation2 + $0x2b0] sm:$0xff]  ;;  %v2407_v24 = vld [vmem:[#allocation2 + $0x228] sm:$0xff] }
  0x20   :  { %1297 = vmatpush.bf16.msra.mxu2 %v2355_v26  ;;  %v69_v22 = vpack.c.bf16 %v50_v16, %v50_v16  ;;  %v2432_v23 = vld [vmem:[#allocation2 + $0x2f0] sm:$0xff]  ;;  %v2415_v25 = vld [vmem:[#allocation2 + $0x268] sm:$0xff]  ;;  %v2422_v30 = vld [vmem:[#allocation2 + $0x2a0] sm:$0xff] }
  0x21   :  { %1310 = vmatpush.bf16.msra.mxu3 %v2363_v27  ;;  %v2423_v26 = vld [vmem:[#allocation2 + $0x2a8] sm:$0xff]  ;;  %v2413_v33 = vld [vmem:[#allocation2 + $0x258] sm:$0xff]  ;;  %v2404_v36 = vld [vmem:[#allocation2 + $0x210] sm:$0xff] }
  0x22   :  { %1272 = vmatpush.bf16.msra.mxu0 %v2338_v28  ;;  %v2431_v27 = vld [vmem:[#allocation2 + $0x2e8] sm:$0xff]  ;;  %v2406_v28 = vld [vmem:[#allocation2 + $0x220] sm:$0xff]  ;;  %v2437_v8 = vld [vmem:[#allocation2 + $0x318] sm:$0xff] }
  0x23   :  { %1285 = vmatpush.bf16.msra.mxu1 %v2346_v29  ;;  %v2414_v29 = vld [vmem:[#allocation2 + $0x260] sm:$0xff]  ;;  %v2411_v41 = vld [vmem:[#allocation2 + $0x248] sm:$0xff]  ;;  %v2453_v10 = vld [vmem:[#allocation2 + $0x398] sm:$0xff] }
  0x24   :  { %1298 = vmatpush.bf16.msra.mxu2 %v2354_v31  ;;  %v2430_v31 = vld [vmem:[#allocation2 + $0x2e0] sm:$0xff]  ;;  %v2461_v11 = vld [vmem:[#allocation2 + $0x3d8] sm:$0xff]  ;;  %v2435_v16 = vld [vmem:[#allocation2 + $0x308] sm:$0xff] }
  0x25   :  { %1311 = vmatpush.bf16.msra.mxu3 %v2362_v37  ;;  %1273 = vmatmul.bf16.vlgmr.msra.gmra.mxu0 %v62_v38  ;;  %v2412_v37 = vld [vmem:[#allocation2 + $0x250] sm:$0xff] }
  0x26   :  { %1317 = vmatpush.bf16.msrb.mxu0 %v2377_v32  ;;  %1286 = vmatmul.bf16.vlgmr.msra.gmra.mxu1 %v63_v43  ;;  %v2405_v32 = vld [vmem:[#allocation2 + $0x218] sm:$0xff]  ;;  %v2420_v38 = vld [vmem:[#allocation2 + $0x290] sm:$0xff]  ;;  %v2427_v43 = vld [vmem:[#allocation2 + $0x2c8] sm:$0xff] }
  0x27   :  { %1330 = vmatpush.bf16.msrb.mxu1 %v2385_v34  ;;  %1299 = vmatmul.bf16.vlgmr.msra.gmra.mxu2 %v64_v40  ;;  %v2421_v34 = vld [vmem:[#allocation2 + $0x298] sm:$0xff]  ;;  %v2403_v40 = vld [vmem:[#allocation2 + $0x208] sm:$0xff] }
  0x28   :  { %1343 = vmatpush.bf16.msrb.mxu2 %v2393_v35  ;;  %1312 = vmatmul.bf16.vlgmr.msra.gmra.mxu3 %v65_v46  ;;  %v2429_v35 = vld [vmem:[#allocation2 + $0x2d8] sm:$0xff]  ;;  %v51_v46 = vld [vmem:[%s2696_s0 + $0x40] sm:$0xff] }
  0x29   :  { %1356 = vmatpush.bf16.msrb.mxu3 %v2401_v39  ;;  %v2428_v39 = vld [vmem:[#allocation2 + $0x2d0] sm:$0xff] }
  0x2a   :  { %1318 = vmatpush.bf16.msrb.mxu0 %v2376_v42  ;;  %v2419_v42 = vld [vmem:[#allocation2 + $0x288] sm:$0xff] }
  0x2b   :  { %1331 = vmatpush.bf16.msrb.mxu1 %v2384_v44  ;;  %v2402_v44 = vld [vmem:[#allocation2 + $0x200] sm:$0xff] }
  0x2c   :  { %1344 = vmatpush.bf16.msrb.mxu2 %v2392_v45  ;;  %v2410_v45 = vld [vmem:[#allocation2 + $0x240] sm:$0xff] }
  0x2d   :  { %1357 = vmatpush.bf16.msrb.mxu3 %v2400_v47  ;;  %v2418_v47 = vld [vmem:[#allocation2 + $0x280] sm:$0xff] }
  0x2e   :  { %1319 = vmatpush.bf16.msrb.mxu0 %v2375_v48  ;;  %v2441_v48 = vld [vmem:[#allocation2 + $0x338] sm:$0xff] }
  0x2f   :  { %1332 = vmatpush.bf16.msrb.mxu1 %v2383_v49  ;;  %v53_v49 = vld [vmem:[%s2696_s0 + $0x50] sm:$0xff] }
  0x30   :  { %1345 = vmatpush.bf16.msrb.mxu2 %v2391_v50  ;;  %v2449_v50 = vld [vmem:[#allocation2 + $0x378] sm:$0xff] }
  0x31   :  { %1358 = vmatpush.bf16.msrb.mxu3 %v2399_v51  ;;  %v2457_v51 = vld [vmem:[#allocation2 + $0x3b8] sm:$0xff] }
  0x32   :  { %1320 = vmatpush.bf16.msrb.mxu0 %v2374_v52  ;;  %v52_v52 = vld [vmem:[%s2696_s0 + $0x48] sm:$0xff] }
  0x33   :  { %1333 = vmatpush.bf16.msrb.mxu1 %v2382_v53  ;;  %v2426_v53 = vld [vmem:[#allocation2 + $0x2c0] sm:$0xff] }
  0x34   :  { %1346 = vmatpush.bf16.msrb.mxu2 %v2390_v54  ;;  %v70_v54 = vpack.c.bf16 %v51_v46, %v51_v46  ;;  %v2468_v46 = vld [vmem:[#allocation2 + $0x410] sm:$0xff] }
  0x35   :  { %1359 = vmatpush.bf16.msrb.mxu3 %v2398_v55  ;;  %v54_v55 = vld [vmem:[%s2696_s0 + $0x58] sm:$0xff] }
  0x36   :  { %1321 = vmatpush.bf16.msrb.mxu0 %v2373_v56  ;;  %v72_v56 = vpack.c.bf16 %v53_v49, %v53_v49  ;;  %v2467_v49 = vld [vmem:[#allocation2 + $0x408] sm:$0xff] }
  0x37   :  { %1334 = vmatpush.bf16.msrb.mxu1 %v2381_v57  ;;  %v2465_v57 = vld [vmem:[#allocation2 + $0x3f8] sm:$0xff] }
  0x38   :  { %1347 = vmatpush.bf16.msrb.mxu2 %v2389_v58  ;;  %v71_v58 = vpack.c.bf16 %v52_v52, %v52_v52  ;;  %v59_v52 = vld [vmem:[%s2696_s0 + $0x80] sm:$0xff] }
  0x39   :  { %1360 = vmatpush.bf16.msrb.mxu3 %v2397_v59  ;;  %v2440_v59 = vld [vmem:[#allocation2 + $0x330] sm:$0xff] }
  0x3a   :  { %1322 = vmatpush.bf16.msrb.mxu0 %v2372_v60  ;;  %v73_v60 = vpack.c.bf16 %v54_v55, %v54_v55  ;;  %v78_v55 = vpack.c.bf16 %v59_v52, %v59_v52  ;;  %v2496_v52 = vld [vmem:[%s2701_s5 + $0x18] sm:$0xff] }
  0x3b   :  { %1335 = vmatpush.bf16.msrb.mxu1 %v2380_v61  ;;  %v2448_v61 = vld [vmem:[#allocation2 + $0x370] sm:$0xff] }
  0x3c   :  { %1348 = vmatpush.bf16.msrb.mxu2 %v2388_v62  ;;  %v2456_v62 = vld [vmem:[#allocation2 + $0x3b0] sm:$0xff] }
  0x3d   :  { %1361 = vmatpush.bf16.msrb.mxu3 %v2396_v63  ;;  %v2464_v63 = vld [vmem:[#allocation2 + $0x3f0] sm:$0xff] }
  0x3e   :  { %1323 = vmatpush.bf16.msrb.mxu0 %v2371_v0  ;;  %v2439_v0 = vld [vmem:[#allocation2 + $0x328] sm:$0xff] }
  0x3f   :  { %1336 = vmatpush.bf16.msrb.mxu1 %v2379_v1  ;;  %v2447_v1 = vld [vmem:[#allocation2 + $0x368] sm:$0xff] }
  0x40   :  { %1349 = vmatpush.bf16.msrb.mxu2 %v2387_v2  ;;  %v2455_v2 = vld [vmem:[#allocation2 + $0x3a8] sm:$0xff] }
  0x41   :  { %1362 = vmatpush.bf16.msrb.mxu3 %v2395_v3  ;;  %v2463_v3 = vld [vmem:[#allocation2 + $0x3e8] sm:$0xff] }
  0x42   :  { %1324 = vmatpush.bf16.msrb.mxu0 %v2370_v4  ;;  %v2438_v4 = vld [vmem:[#allocation2 + $0x320] sm:$0xff] }
  0x43   :  { %1337 = vmatpush.bf16.msrb.mxu1 %v2378_v5  ;;  %v2446_v5 = vld [vmem:[#allocation2 + $0x360] sm:$0xff] }
  0x44   :  { %1350 = vmatpush.bf16.msrb.mxu2 %v2386_v6  ;;  %v2454_v6 = vld [vmem:[#allocation2 + $0x3a0] sm:$0xff] }
  0x45   :  { %1363 = vmatpush.bf16.msrb.mxu3 %v2394_v13  ;;  %1325 = vmatmul.bf16.vlgmr.msrb.gmra.mxu0 %v66_v17  ;;  %v2444_v13 = vld [vmem:[#allocation2 + $0x350] sm:$0xff]  ;;  %v2443_v17 = vld [vmem:[#allocation2 + $0x348] sm:$0xff] }
  0x46   :  { %1369 = vmatpush.bf16.msra.mxu0 %v2409_v7  ;;  %1338 = vmatmul.bf16.vlgmr.msrb.gmra.mxu1 %v67_v18  ;;  %v2462_v7 = vld [vmem:[#allocation2 + $0x3e0] sm:$0xff]  ;;  %v2451_v18 = vld [vmem:[#allocation2 + $0x388] sm:$0xff] }
  0x47   :  { %1382 = vmatpush.bf16.msra.mxu1 %v2417_v9  ;;  %1351 = vmatmul.bf16.vlgmr.msrb.gmra.mxu2 %v68_v15  ;;  %v2445_v9 = vld [vmem:[#allocation2 + $0x358] sm:$0xff]  ;;  %v2460_v15 = vld [vmem:[#allocation2 + $0x3d0] sm:$0xff] }
  0x48   :  { %1395 = vmatpush.bf16.msra.mxu2 %v2425_v12  ;;  %1364 = vmatmul.bf16.vlgmr.msrb.gmra.mxu3 %v69_v22  ;;  %v2436_v12 = vld [vmem:[#allocation2 + $0x310] sm:$0xff]  ;;  %v2442_v22 = vld [vmem:[#allocation2 + $0x340] sm:$0xff] }
  0x49   :  { %1408 = vmatpush.bf16.msra.mxu3 %v2433_v14  ;;  %v2452_v14 = vld [vmem:[#allocation2 + $0x390] sm:$0xff] }
  0x4a   :  { %1370 = vmatpush.bf16.msra.mxu0 %v2408_v19  ;;  %v2459_v19 = vld [vmem:[#allocation2 + $0x3c8] sm:$0xff] }
  0x4b   :  { %1383 = vmatpush.bf16.msra.mxu1 %v2416_v20  ;;  %v2434_v20 = vld [vmem:[#allocation2 + $0x300] sm:$0xff] }
  0x4c   :  { %1396 = vmatpush.bf16.msra.mxu2 %v2424_v21  ;;  %v55_v21 = vld [vmem:[%s2696_s0 + $0x60] sm:$0xff] }
  0x4d   :  { %1409 = vmatpush.bf16.msra.mxu3 %v2432_v23  ;;  %v2473_v23 = vld [vmem:[#allocation2 + $0x438] sm:$0xff] }
  0x4e   :  { %1371 = vmatpush.bf16.msra.mxu0 %v2407_v24  ;;  %v56_v24 = vld [vmem:[%s2696_s0 + $0x68] sm:$0xff] }
  0x4f   :  { %1384 = vmatpush.bf16.msra.mxu1 %v2415_v25  ;;  %v2450_v25 = vld [vmem:[#allocation2 + $0x380] sm:$0xff] }
  0x50   :  { %1397 = vmatpush.bf16.msra.mxu2 %v2423_v26  ;;  %v2481_v26 = vld [vmem:[#allocation2 + $0x478] sm:$0xff] }
  0x51   :  { %1410 = vmatpush.bf16.msra.mxu3 %v2431_v27  ;;  %v57_v27 = vld [vmem:[%s2696_s0 + $0x70] sm:$0xff] }
  0x52   :  { %1372 = vmatpush.bf16.msra.mxu0 %v2406_v28  ;;  %v2458_v28 = vld [vmem:[#allocation2 + $0x3c0] sm:$0xff] }
  0x53   :  { %1385 = vmatpush.bf16.msra.mxu1 %v2414_v29  ;;  %v74_v29 = vpack.c.bf16 %v55_v21, %v55_v21 }
  0x54   :  { %1398 = vmatpush.bf16.msra.mxu2 %v2422_v30  ;;  %v58_v30 = vld [vmem:[%s2696_s0 + $0x78] sm:$0xff] }
  0x55   :  { %1411 = vmatpush.bf16.msra.mxu3 %v2430_v31  ;;  %v75_v31 = vpack.c.bf16 %v56_v24, %v56_v24  ;;  %v2489_v24 = vld [vmem:[%s2699_s3 + $0x20] sm:$0xff] }
  0x56   :  { %1373 = vmatpush.bf16.msra.mxu0 %v2405_v32  ;;  %v2484_v32 = vld [vmem:[#allocation2 + $0x490] sm:$0xff] }
  0x57   :  { %1386 = vmatpush.bf16.msra.mxu1 %v2413_v33  ;;  %v76_v33 = vpack.c.bf16 %v57_v27, %v57_v27  ;;  %v2488_v27 = vld [vmem:[%s2699_s3 + $0x18] sm:$0xff] }
  0x58   :  { %1399 = vmatpush.bf16.msra.mxu2 %v2421_v34  ;;  %v2472_v34 = vld [vmem:[#allocation2 + $0x430] sm:$0xff] }
  0x59   :  { %1412 = vmatpush.bf16.msra.mxu3 %v2429_v35  ;;  %v77_v35 = vpack.c.bf16 %v58_v30, %v58_v30 }
  0x5a   :  { %1374 = vmatpush.bf16.msra.mxu0 %v2404_v36  ;;  %v2480_v36 = vld [vmem:[#allocation2 + $0x470] sm:$0xff] }
  0x5b   :  { %1387 = vmatpush.bf16.msra.mxu1 %v2412_v37  ;;  %v2483_v37 = vld [vmem:[#allocation2 + $0x488] sm:$0xff] }
  0x5c   :  { %1400 = vmatpush.bf16.msra.mxu2 %v2420_v38  ;;  %v2471_v38 = vld [vmem:[#allocation2 + $0x428] sm:$0xff] }
  0x5d   :  { %1413 = vmatpush.bf16.msra.mxu3 %v2428_v39  ;;  %v2479_v39 = vld [vmem:[#allocation2 + $0x468] sm:$0xff] }
  0x5e   :  { %1375 = vmatpush.bf16.msra.mxu0 %v2403_v40  ;;  %v2482_v40 = vld [vmem:[#allocation2 + $0x480] sm:$0xff] }
  0x5f   :  { %1388 = vmatpush.bf16.msra.mxu1 %v2411_v41  ;;  %v2470_v41 = vld [vmem:[#allocation2 + $0x420] sm:$0xff] }
  0x60   :  { %1401 = vmatpush.bf16.msra.mxu2 %v2419_v42  ;;  %v2478_v42 = vld [vmem:[#allocation2 + $0x460] sm:$0xff] }
  0x61   :  { %1414 = vmatpush.bf16.msra.mxu3 %v2427_v43  ;;  %v2469_v43 = vld [vmem:[#allocation2 + $0x418] sm:$0xff] }
  0x62   :  { %1376 = vmatpush.bf16.msra.mxu0 %v2402_v44  ;;  %v2477_v44 = vld [vmem:[#allocation2 + $0x458] sm:$0xff] }
  0x63   :  { %1389 = vmatpush.bf16.msra.mxu1 %v2410_v45  ;;  %v61_v45 = vld [vmem:[%s2696_s0 + $0x90] sm:$0xff] }
  0x64   :  { %1402 = vmatpush.bf16.msra.mxu2 %v2418_v47  ;;  %v80_v47 = vpack.c.bf16 %v61_v45, %v61_v45  ;;  %v2498_v45 = vld [vmem:[%s2701_s5 + $0x28] sm:$0xff] }
  0x65   :  { %1415 = vmatpush.bf16.msra.mxu3 %v2426_v53  ;;  %1377 = vmatmul.bf16.vlgmr.msra.gmra.mxu0 %v70_v54  ;;  %v2474_v53 = vld [vmem:[#allocation2 + $0x440] sm:$0xff]  ;;  %v60_v54 = vld [vmem:[%s2696_s0 + $0x88] sm:$0xff] }
  0x66   :  { %1421 = vmatpush.bf16.msrb.mxu0 %v2441_v48  ;;  %1390 = vmatmul.bf16.vlgmr.msra.gmra.mxu1 %v71_v58  ;;  %v2476_v48 = vld [vmem:[#allocation2 + $0x450] sm:$0xff] }
  0x67   :  { %1434 = vmatpush.bf16.msrb.mxu1 %v2449_v50  ;;  %1403 = vmatmul.bf16.vlgmr.msra.gmra.mxu2 %v72_v56  ;;  %v2475_v50 = vld [vmem:[#allocation2 + $0x448] sm:$0xff]  ;;  %v79_v56 = vpack.c.bf16 %v60_v54, %v60_v54 }
  0x68   :  { %1447 = vmatpush.bf16.msrb.mxu2 %v2457_v51  ;;  %1416 = vmatmul.bf16.vlgmr.msra.gmra.mxu3 %v73_v60  ;;  %v2466_v51 = vld [vmem:[#allocation2 + $0x400] sm:$0xff] }
  0x69   :  { %1460 = vmatpush.bf16.msrb.mxu3 %v2465_v57  ;;  %v2504_v57 = vld [vmem:[%s2698_s2] ss:$0 sm:$0xff] }
  0x6a   :  { %1422 = vmatpush.bf16.msrb.mxu0 %v2440_v59 }
  0x6b   :  { %1435 = vmatpush.bf16.msrb.mxu1 %v2448_v61 }
  0x6c   :  { %1448 = vmatpush.bf16.msrb.mxu2 %v2456_v62 }
  0x6d   :  { %1461 = vmatpush.bf16.msrb.mxu3 %v2464_v63 }
  0x6e   :  { %1423 = vmatpush.bf16.msrb.mxu0 %v2439_v0 }
  0x6f   :  { %1436 = vmatpush.bf16.msrb.mxu1 %v2447_v1 }
  0x70   :  { %1449 = vmatpush.bf16.msrb.mxu2 %v2455_v2 }
  0x71   :  { %1462 = vmatpush.bf16.msrb.mxu3 %v2463_v3 }
  0x72   :  { %1424 = vmatpush.bf16.msrb.mxu0 %v2438_v4 }
  0x73   :  { %1437 = vmatpush.bf16.msrb.mxu1 %v2446_v5 }
  0x74   :  { %1450 = vmatpush.bf16.msrb.mxu2 %v2454_v6 }
  0x75   :  { %1463 = vmatpush.bf16.msrb.mxu3 %v2462_v7 }
  0x76   :  { %1425 = vmatpush.bf16.msrb.mxu0 %v2437_v8 }
  0x77   :  { %1438 = vmatpush.bf16.msrb.mxu1 %v2445_v9 }
  0x78   :  { %1451 = vmatpush.bf16.msrb.mxu2 %v2453_v10 }
  0x79   :  { %1464 = vmatpush.bf16.msrb.mxu3 %v2461_v11 }
  0x7a   :  { %1426 = vmatpush.bf16.msrb.mxu0 %v2436_v12 }
  0x7b   :  { %1439 = vmatpush.bf16.msrb.mxu1 %v2444_v13 }
  0x7c   :  { %1452 = vmatpush.bf16.msrb.mxu2 %v2452_v14 }
  0x7d   :  { %1465 = vmatpush.bf16.msrb.mxu3 %v2460_v15 }
  0x7e   :  { %1427 = vmatpush.bf16.msrb.mxu0 %v2435_v16  ;;  %v2492_v16 = vld [vmem:[%s2699_s3 + $0x38] sm:$0xff] }
  0x7f   :  { %1440 = vmatpush.bf16.msrb.mxu1 %v2443_v17 }
  0x80   :  { %1453 = vmatpush.bf16.msrb.mxu2 %v2451_v18 }
  0x81   :  { %1466 = vmatpush.bf16.msrb.mxu3 %v2459_v19  ;;  %v2491_v19 = vld [vmem:[%s2699_s3 + $0x30] sm:$0xff] }
  0x82   :  { %1428 = vmatpush.bf16.msrb.mxu0 %v2434_v20 }
  0x83   :  { %1441 = vmatpush.bf16.msrb.mxu1 %v2442_v22  ;;  %v2490_v22 = vld [vmem:[%s2699_s3 + $0x28] sm:$0xff] }
  0x84   :  { %1454 = vmatpush.bf16.msrb.mxu2 %v2450_v25 }
  0x85   :  { %1467 = vmatpush.bf16.msrb.mxu3 %v2458_v28  ;;  %1429 = vmatmul.bf16.vlgmr.msrb.gmra.mxu0 %v74_v29  ;;  %v2487_v29 = vld [vmem:[%s2699_s3 + $0x10] sm:$0xff] }
  0x86   :  { %1473 = vmatpush.bf16.msra.mxu0 %v2473_v23  ;;  %1442 = vmatmul.bf16.vlgmr.msrb.gmra.mxu1 %v75_v31 }
  0x87   :  { %1486 = vmatpush.bf16.msra.mxu1 %v2481_v26  ;;  %1455 = vmatmul.bf16.vlgmr.msrb.gmra.mxu2 %v76_v33  ;;  %v2486_v33 = vld [vmem:[%s2699_s3 + $0x8] sm:$0xff] }
  0x88   :  { %1504 = vmatpush.bf16.msra.mxu2 %v2484_v32  ;;  %1468 = vmatmul.bf16.vlgmr.msrb.gmra.mxu3 %v77_v35  ;;  %v2485_v35 = vld [vmem:[%s2699_s3] sm:$0xff] }
  0x89   :  { %1582 = vmatpush.bf16.msra.mxu3 %v2492_v16 }
  0x8a   :  { %1474 = vmatpush.bf16.msra.mxu0 %v2472_v34 }
  0x8b   :  { %1487 = vmatpush.bf16.msra.mxu1 %v2480_v36 }
  0x8c   :  { %1505 = vmatpush.bf16.msra.mxu2 %v2483_v37 }
  0x8d   :  { %1583 = vmatpush.bf16.msra.mxu3 %v2491_v19 }
  0x8e   :  { %1475 = vmatpush.bf16.msra.mxu0 %v2471_v38 }
  0x8f   :  { %1488 = vmatpush.bf16.msra.mxu1 %v2479_v39  ;;  %v2500_v39 = vld [vmem:[%s2701_s5 + $0x38] sm:$0xff] }
  0x90   :  { %1506 = vmatpush.bf16.msra.mxu2 %v2482_v40 }
  0x91   :  { %1584 = vmatpush.bf16.msra.mxu3 %v2490_v22 }
  0x92   :  { %1476 = vmatpush.bf16.msra.mxu0 %v2470_v41 }
  0x93   :  { %1489 = vmatpush.bf16.msra.mxu1 %v2478_v42 }
  0x94   :  { %1665 = vmatpush.bf16.msrb.mxu2 %v2500_v39 }
  0x95   :  { %1585 = vmatpush.bf16.msra.mxu3 %v2489_v24 }
  0x96   :  { %1477 = vmatpush.bf16.msra.mxu0 %v2469_v43  ;;  %v2499_v43 = vld [vmem:[%s2701_s5 + $0x30] sm:$0xff] }
  0x97   :  { %1490 = vmatpush.bf16.msra.mxu1 %v2477_v44  ;;  %2273 = vmatmul.msk.bf16.vlgmr.msra.gmra.mxu2 %vm1261_vm0, %v80_v47 }
  0x98   :  { %1666 = vmatpush.bf16.msrb.mxu2 %v2499_v43 }
  0x99   :  { %1586 = vmatpush.bf16.msra.mxu3 %v2488_v27 }
  0x9a   :  { %1478 = vmatpush.bf16.msra.mxu0 %v2468_v46 }
  0x9b   :  { %1491 = vmatpush.bf16.msra.mxu1 %v2476_v48 }
  0x9c   :  { %1667 = vmatpush.bf16.msrb.mxu2 %v2498_v45 }
  0x9d   :  { %1587 = vmatpush.bf16.msra.mxu3 %v2487_v29 }
  0x9e   :  { %1479 = vmatpush.bf16.msra.mxu0 %v2467_v49 }
  0x9f   :  { %1492 = vmatpush.bf16.msra.mxu1 %v2475_v50  ;;  %v2497_v50 = vld [vmem:[%s2701_s5 + $0x20] sm:$0xff] }
  0xa0   :  { %1668 = vmatpush.bf16.msrb.mxu2 %v2497_v50 }
  0xa1   :  { %1588 = vmatpush.bf16.msra.mxu3 %v2486_v33 }
  0xa2   :  { %1480 = vmatpush.bf16.msra.mxu0 %v2466_v51  ;;  %v1274_v58 = vpop.f32.mrf.mxu0 }
  0xa3   :  { %1493 = vmatpush.bf16.msra.mxu1 %v2474_v53  ;;  %v1275_v59 = vadd.f32 %v2504_v57, %v1274_v58  ;;  %v1287_v60 = vpop.f32.mrf.mxu1 }
  0xa4   :  { %1669 = vmatpush.bf16.msrb.mxu2 %v2496_v52 }
  0xa5   :  { %1481 = vmatmul.bf16.vlgmr.msra.gmra.mxu0 %v78_v55  ;;  %v1288_v61 = vadd.f32 %v1287_v60, %v1275_v59  ;;  %1589 = vmatpush.bf16.msra.mxu3 %v2485_v35  ;;  %v2495_v55 = vld [vmem:[%s2701_s5 + $0x10] sm:$0xff] }
  0xa6   :  { %1494 = vmatmul.bf16.vlgmr.msra.gmra.mxu1 %v79_v56 }
  0xa8   :  { %1670 = vmatpush.bf16.msrb.mxu2 %v2495_v55 }
  0xaa   :  { %v1300_v62 = vpop.f32.mrf.mxu2  ;;  %v1276_v0 = vpop.f32.mrf.mxu0 }
  0xab   :  { %v1301_v63 = vadd.f32 %v1300_v62, %v1288_v61  ;;  %v1313_v1 = vpop.f32.mrf.mxu3  ;;  %v1289_v2 = vpop.f32.mrf.mxu1 }
  0xad   :  { %v1314_v3 = vadd.f32 %v1313_v1, %v1301_v63 }
  0xb2   :  { %v1302_v4 = vpop.f32.mrf.mxu2 }
  0xb3   :  { %v1315_v5 = vpop.f32.mrf.mxu3  ;;  %v2493_v4 = vld [vmem:[%s2701_s5] sm:$0xff] }
  0xb4   :  { %v2505_v5 = vld [vmem:[%s2700_s4] ss:$0 sm:$0xff] }
  0xc2   :  { %v1326_v6 = vpop.f32.mrf.mxu0 }
  0xc3   :  { %v1339_v7 = vpop.f32.mrf.mxu1  ;;  %v1327_v26 = vadd.f32 %v1326_v6, %v1314_v3  ;;  %v2494_v3 = vld [vmem:[%s2701_s5 + $0x8] sm:$0xff] }
  0xc4   :  { %1671 = vmatpush.bf16.msrb.mxu2 %v2494_v3 }
  0xc5   :  { %v1340_v28 = vadd.f32 %v1339_v7, %v1327_v26 }
  0xc8   :  { %1672 = vmatpush.bf16.msrb.mxu2 %v2493_v4 }
  0xca   :  { %v1352_v8 = vpop.f32.mrf.mxu2  ;;  %v1328_v10 = vpop.f32.mrf.mxu0 }
  0xcb   :  { %v1365_v9 = vpop.f32.mrf.mxu3  ;;  %v1341_v11 = vpop.f32.mrf.mxu1  ;;  %v1353_v30 = vadd.f32 %v1352_v8, %v1340_v28 }
  0xcc   :  { %v2506_v11 = vld [vmem:[%s2702_s6] ss:$0 sm:$0xff] }
  0xcd   :  { %v1366_v34 = vadd.f32 %v1365_v9, %v1353_v30 }
  0xd2   :  { %v1354_v12 = vpop.f32.mrf.mxu2 }
  0xd3   :  { %v1367_v13 = vpop.f32.mrf.mxu3 }
  0xe2   :  { %v1378_v14 = vpop.f32.mrf.mxu0 }
  0xe3   :  { %v1391_v15 = vpop.f32.mrf.mxu1  ;;  %v1379_v36 = vadd.f32 %v1378_v14, %v1366_v34 }
  0xe5   :  { %v1392_v42 = vadd.f32 %v1391_v15, %v1379_v36 }
  0xea   :  { %v1404_v17 = vpop.f32.mrf.mxu2  ;;  %v1380_v18 = vpop.f32.mrf.mxu0 }
  0xeb   :  { %v1417_v20 = vpop.f32.mrf.mxu3  ;;  %v1393_v21 = vpop.f32.mrf.mxu1  ;;  %v1405_v44 = vadd.f32 %v1404_v17, %v1392_v42 }
  0xed   :  { %v1418_v46 = vadd.f32 %v1417_v20, %v1405_v44 }
  0xf2   :  { %v1406_v23 = vpop.f32.mrf.mxu2 }
  0xf3   :  { %v1419_v25 = vpop.f32.mrf.mxu3 }
 0x102   :  { %v1430_v31 = vpop.f32.mrf.mxu0 }
 0x103   :  { %v1443_v32 = vpop.f32.mrf.mxu1  ;;  %v1431_v49 = vadd.f32 %v1430_v31, %v1418_v46 }
 0x105   :  { %v1444_v51 = vadd.f32 %v1443_v32, %v1431_v49 }
 0x10a   :  { %v1456_v37 = vpop.f32.mrf.mxu2  ;;  %v1432_v38 = vpop.f32.mrf.mxu0 }
 0x10b   :  { %v1469_v40 = vpop.f32.mrf.mxu3  ;;  %v1445_v41 = vpop.f32.mrf.mxu1  ;;  %v1457_v53 = vadd.f32 %v1456_v37, %v1444_v51 }
 0x10d   :  { %v1470_v56 = vadd.f32 %v1469_v40, %v1457_v53 }
 0x112   :  { %v1458_v47 = vpop.f32.mrf.mxu2 }
 0x113   :  { %v1471_v48 = vpop.f32.mrf.mxu3 }
 0x11a   :  { %v1508_v54 = vpop.f32.mrf.mxu2 }
 0x122   :  { %v1482_v57 = vpop.f32.mrf.mxu0  ;;  %v1510_v61 = vpop.f32.mrf.mxu2 }
 0x123   :  { %v1483_v58 = vadd.f32 %v1482_v57, %v1470_v56  ;;  %v1495_v59 = vpop.f32.mrf.mxu1 }
 0x125   :  { %v1496_v60 = vadd.f32 %v1495_v59, %v1483_v58 }
 0x127   :  { %v1509_v62 = vadd.f32 %v1508_v54, %v1496_v60 }
 0x129   :  { %v1512_v63 = vmax.f32 %v1509_v62, 0.0 }
 0x12a   :  { %v1484_v0 = vpop.f32.mrf.mxu0 }
 0x12b   :  { %v1513_v1 = vpack.c.bf16 %v1512_v63, %v1512_v63  ;;  %v1497_v2 = vpop.f32.mrf.mxu1 }
 0x12d   :  { %1590 = vmatmul.bf16.vlgmr.msra.gmra.mxu3 %v1513_v1 }
 0x1b0   :  { %v1591_v6 = vpop.f32.mrf.mxu3 }
 0x1b1   :  { %v1592_v7 = vadd.f32 %v2505_v5, %v1591_v6 }
 0x1b3   :  { %v1595_v8 = vmax.f32 %v1592_v7, 0.0 }
 0x1b5   :  { %v1596_v9 = vpack.c.bf16 %v1595_v8, %v1595_v8 }
 0x1b7   :  { %1673 = vmatmul.bf16.vlgmr.msrb.gmra.mxu2 %v1596_v9 }
 0x1b8   :  { %v1593_v10 = vpop.f32.mrf.mxu3 }
 0x23a   :  { %v1674_v12 = vpop.f32.mrf.mxu2 }
 0x23b   :  { %v1675_v13 = vadd.f32 %v2506_v11, %v1674_v12 }
 0x23d   :  { %1679 = vst.msk [vmem:[%s2703_s7] sm:$0xff] %vm1678_vm1, %v1675_v13 }
 0x242   :  { %v1676_v14 = vpop.f32.mrf.mxu2 }
 0x243   :  { %1684 = vsyncpa [#allocation3], 1 }

</bundles_post_ra>
